<compile_context>
chip_gen: v5e
topology: v5e:2x2
jax: 0.10.0
libtpu: 0.0.40
codegen_flags: <defaults>
</compile_context>

<pallas_src>
import functools

import jax
import jax.numpy as jnp
from jax import lax
from jax.experimental import pallas as pl
from jax.experimental.pallas import tpu as pltpu


def _round_up(x: int, m: int) -> int:
    return ((x + m - 1) // m) * m


def _cdiv(a: int, b: int) -> int:
    return (a + b - 1) // b


def _norm_linear_residual_kernel(x_ref, gamma_ref, beta_ref, w_ref, b_ref,
                                 o_ref, xn_ref, *, eps, hidden):
    """One (token-tile i, output-column-tile j) step.

    x_ref     : (tm, Hp)   full-width token rows (LayerNorm + residual); index (i, 0)
    gamma/beta: (1, Hp)    LayerNorm affine params (zero-padded past `hidden`)
    w_ref     : (Hp, tn)   (in, out) weight slab for this output-column tile
    b_ref     : (1, tn)    bias slice
    o_ref     : (tm, tn)   output tile
    xn_ref    : (tm, Hp)   VMEM scratch holding the normalized rows in MXU dtype
    """
    j = pl.program_id(1)
    h_pad = x_ref.shape[-1]
    tn = o_ref.shape[-1]

    # LayerNorm once per token tile (first column tile); later column tiles
    # reuse the cached normalized rows.  Requires i-outer / j-inner sequential
    # iteration -> the j axis must stay "arbitrary".
    @pl.when(j == 0)
    def _():
        xf = x_ref[...].astype(jnp.float32)
        inv_h = jnp.float32(1.0 / hidden)
        mean = jnp.sum(xf, axis=-1, keepdims=True) * inv_h
        if h_pad == hidden:
            centered = xf - mean
            var = jnp.sum(centered * centered, axis=-1, keepdims=True) * inv_h
            xn = centered * lax.rsqrt(var + eps)
        else:
            # Padded lanes of x are zero, so raw sums already cover only the
            # real `hidden` lanes; two-moment variance avoids the lane mask.
            # Padded xn lanes are killed by the zero-padded gamma/beta and the
            # zero-padded weight rows, so they never reach the output.
            ex2 = jnp.sum(xf * xf, axis=-1, keepdims=True) * inv_h
            var = jnp.maximum(ex2 - mean * mean, 0.0)
            xn = (xf - mean) * lax.rsqrt(var + eps)
        xn = (xn * gamma_ref[...].astype(jnp.float32)
              + beta_ref[...].astype(jnp.float32))
        xn_ref[...] = xn.astype(xn_ref.dtype)

    # y = xn @ W_t  (W_t is the pre-transposed (in, out) weight) — f32 accum.
    y = jnp.dot(xn_ref[...], w_ref[...], preferred_element_type=jnp.float32)
    y = y + b_ref[...].astype(jnp.float32)

    # TODO(synk): training-mode dropout (p=0.1) not implemented; identity in eval.

    # Residual comes from the resident full-width row tile (no second HBM read).
    if tn == h_pad:
        resid = x_ref[...]
    else:
        col0 = pl.multiple_of(j * tn, 128)
        resid = x_ref[:, pl.ds(col0, tn)]
    o_ref[...] = (resid.astype(jnp.float32) + y).astype(o_ref.dtype)


def normalization_module_forward(hidden_states, gamma, beta, weight, bias, *,
                                 eps=1e-12, tm=None, tn=None, mxu_dtype=None):
    """JAX/Pallas equivalent of NormalizationModule.forward (eval mode).

    hidden_states: [B, S, H]
    gamma, beta  : [H]       (LayerNorm affine params)
    weight       : [H, H]    (PyTorch Linear weight, out x in — NOT pre-transposed)
    bias         : [H]
    """
    B, S, H = hidden_states.shape
    N = B * S
    x_dtype = hidden_states.dtype
    x_bytes = jnp.dtype(x_dtype).itemsize

    # MXU operand dtype: bf16 (f32 accumulation) for 16-bit inputs or any
    # production-sized hidden dim; f32 only for small-H strict-numerics cases.
    if mxu_dtype is None:
        low_prec = (x_bytes <= 2) or (jnp.dtype(weight.dtype).itemsize <= 2)
        mxu_dtype = jnp.bfloat16 if (low_prec or H >= 512) else jnp.float32
    mxu_dtype = jnp.dtype(mxu_dtype)
    mxu_bytes = mxu_dtype.itemsize

    # Per-generation VMEM budget (v7x: 64 MiB -> ~50 MiB, v5e/v6e: 128 MiB ->
    # ~100 MiB), leaving headroom for compiler-internal scratch/semaphores.
    try:
        vmem_cap = int(getattr(pltpu.get_tpu_info(), "vmem_capacity_bytes",
                               64 * 2**20))
    except Exception:
        vmem_cap = 64 * 2**20
    vmem_budget = int(vmem_cap * 0.78)

    # ---- tiling -------------------------------------------------------------
    h_pad = max(_round_up(H, 128), 128)
    sub = 16 if (x_bytes == 2 or mxu_bytes == 2) else 8

    if tm is None:
        tm = 512 if vmem_cap > 96 * 2**20 else 256
    tm = max(sub, min(_round_up(tm, sub), _round_up(N, sub)))
    # Give the parallel token axis >=2 tiles when possible (v7x has 2 TCs).
    if _cdiv(N, tm) < 2 and N > sub:
        tm = max(sub, _round_up(_cdiv(N, 2), sub))

    def _est_vmem(tm_, tn_):
        w_buf = 1 if tn_ == h_pad else 2            # resident weight single-buffered
        return (2 * tm_ * h_pad * x_bytes           # x rows (double-buffered)
                + 2 * tm_ * tn_ * x_bytes           # output tile
                + w_buf * tn_ * h_pad * mxu_bytes   # weight slab
                + 2 * h_pad * 4                     # gamma + beta
                + w_buf * tn_ * 4                   # bias slice
                + tm_ * h_pad * mxu_bytes)          # xn scratch

    if tn is None:
        while True:
            if _est_vmem(tm, h_pad) <= vmem_budget:
                tn = h_pad                          # keep the whole weight resident
                break
            cand = None
            t = min(1024, h_pad)
            while t >= 128:
                if h_pad % t == 0 and _est_vmem(tm, t) <= vmem_budget:
                    cand = t
                    break
                t -= 128
            if cand is not None:
                tn = cand
                break
            if tm <= sub:
                tn = 128
                break
            tm = max(sub, _round_up(tm // 2, sub))
    else:
        tn = max(128, min(_round_up(tn, 128), h_pad))
        while h_pad % tn:
            tn -= 128

    grid = (_cdiv(N, tm), h_pad // tn)
    weight_resident = (tn == h_pad)

    # ---- operand prep (no token-dim padding; lane pad only when H % 128 != 0) -
    x2d = hidden_states.reshape(N, H)
    if h_pad != H:
        x2d = jnp.pad(x2d, ((0, 0), (0, h_pad - H)))

    def _row(v):
        v = v.reshape(1, H)
        if h_pad != H:
            v = jnp.pad(v, ((0, 0), (0, h_pad - H)))
        return v

    gamma2d, beta2d, bias2d = _row(gamma), _row(beta), _row(bias)

    # One-time (in, out) transposed copy of the Linear weight -> plain MK x KN
    # on the MXU (no per-tile transpose), cast to the MXU dtype.
    w_t = weight.T.astype(mxu_dtype)
    if h_pad != H:
        w_t = jnp.pad(w_t, ((0, h_pad - H), (0, h_pad - H)))

    # ---- compiler params / cost hint -----------------------------------------
    cp_kwargs = dict(dimension_semantics=("parallel", "arbitrary"))
    if _est_vmem(tm, tn) > 8 * 2**20:
        cp_kwargs["vmem_limit_bytes"] = vmem_budget

    w_passes = 1 if weight_resident else grid[0]
    cost = pl.CostEstimate(
        flops=int(2 * N * H * H + 10 * N * H),
        transcendentals=int(N),
        bytes_accessed=int(2 * N * h_pad * x_bytes
                           + w_passes * h_pad * h_pad * mxu_bytes
                           + 3 * h_pad * 4),
    )

    kernel = functools.partial(_norm_linear_residual_kernel, eps=eps, hidden=H)
    out_shape = jax.ShapeDtypeStruct((N, h_pad), x_dtype)

    def _call(single_buffer):
        def inv_spec(shape, idx):
            if single_buffer:
                return pl.BlockSpec(shape, idx, pipeline_mode=pl.Buffered(1))
            return pl.BlockSpec(shape, idx)

        w_spec = inv_spec if (single_buffer and weight_resident) else pl.BlockSpec
        in_specs = [
            pl.BlockSpec((tm, h_pad), lambda i, j: (i, 0)),   # x rows (LN + residual)
            inv_spec((1, h_pad), lambda i, j: (0, 0)),        # gamma (grid-invariant)
            inv_spec((1, h_pad), lambda i, j: (0, 0)),        # beta  (grid-invariant)
            w_spec((h_pad, tn), lambda i, j: (0, j)),         # weight (in, out) slab
            w_spec((1, tn), lambda i, j: (0, j)),             # bias slice
        ]
        return pl.pallas_call(
            kernel,
            out_shape=out_shape,
            grid_spec=pltpu.PrefetchScalarGridSpec(
                num_scalar_prefetch=0,
                grid=grid,
                in_specs=in_specs,
                out_specs=pl.BlockSpec((tm, tn), lambda i, j: (i, j)),
                scratch_shapes=[pltpu.VMEM((tm, h_pad), mxu_dtype)],
            ),
            compiler_params=pltpu.CompilerParams(**cp_kwargs),
            cost_estimate=cost,
        )(x2d, gamma2d, beta2d, w_t, bias2d)

    try:
        out2d = _call(True)
    except Exception:
        # pl.Buffered(1) (single-buffering of grid-invariant operands) not
        # available on this JAX build — fall back to default double-buffering
        # (identical numerics, slightly more VMEM).
        out2d = _call(False)

    if h_pad != H:
        out2d = out2d[:, :H]
    return out2d.reshape(B, S, H)


def _reference(hidden_states, gamma, beta, weight, bias, eps):
    xf = hidden_states.astype(jnp.float32)
    mean = jnp.mean(xf, axis=-1, keepdims=True)
    var = jnp.mean((xf - mean) ** 2, axis=-1, keepdims=True)
    xn = (xf - mean) / jnp.sqrt(var + eps) * gamma + beta
    y = xn @ weight.T.astype(jnp.float32) + bias
    return (xf + y).astype(hidden_states.dtype)


if __name__ == "__main__":
    key = jax.random.PRNGKey(0)
    k_x, k_g, k_b, k_w, k_bias = jax.random.split(key, 5)

    B, S, H = 2, 8, 32
    eps = 1e-12

    x = jax.random.normal(k_x, (B, S, H), dtype=jnp.float32)
    # Deterministic synthetic parameters (shapes match nn.LayerNorm / nn.Linear)
    gamma = 1.0 + 0.01 * jax.random.normal(k_g, (H,), dtype=jnp.float32)
    beta = 0.01 * jax.random.normal(k_b, (H,), dtype=jnp.float32)
    weight = jax.random.normal(k_w, (H, H), dtype=jnp.float32) / jnp.sqrt(H)
    bias = 0.01 * jax.random.normal(k_bias, (H,), dtype=jnp.float32)

    ref = _reference(x, gamma, beta, weight, bias, eps)

    # Default path: small H -> f32 MXU operands (strict numerics).
    out = normalization_module_forward(x, gamma, beta, weight, bias, eps=eps)
    out = jax.block_until_ready(out)
    assert out.shape == (B, S, H)
    assert jnp.allclose(out, ref, atol=1e-4, rtol=1e-4), "f32 mismatch vs reference"

    # bf16-MXU fast path (the default for production-sized H); f32 accumulation.
    out_bf16 = normalization_module_forward(x, gamma, beta, weight, bias,
                                            eps=eps, mxu_dtype=jnp.bfloat16)
    out_bf16 = jax.block_until_ready(out_bf16)
    assert jnp.allclose(out_bf16, ref, atol=5e-2, rtol=5e-2), "bf16 mismatch vs reference"

    print("KERNEL_OK")
</pallas_src>

<mosaic_0001>
module attributes {stable_mosaic.version = 11 : i64} {
  func.func @_norm_linear_residual_kernel(%arg0: i32, %arg1: i32, %arg2: memref<8x128xf32, #tpu.memory_space<vmem>>, %arg3: memref<1x128xf32, #tpu.memory_space<vmem>>, %arg4: memref<1x128xf32, #tpu.memory_space<vmem>>, %arg5: memref<128x128xf32, #tpu.memory_space<vmem>>, %arg6: memref<1x128xf32, #tpu.memory_space<vmem>>, %arg7: memref<8x128xf32, #tpu.memory_space<vmem>>, %arg8: memref<8x128xf32, #tpu.memory_space<vmem>>) attributes {dimension_semantics = [#tpu.dimension_semantics<parallel>, #tpu.dimension_semantics<arbitrary>], iteration_bounds = array<i64: 2, 1>, scalar_prefetch = 0 : i64, scratch_operands = 1 : i64, tpu.core_type = #tpu.core_type<tc>, window_params = [{transform_indices = @transform_0, window_bounds = array<i64: 8, 128>}, {pipeline_mode = #tpu.pipeline_mode<synchronous>, transform_indices = @transform_1, window_bounds = array<i64: 1, 128>}, {pipeline_mode = #tpu.pipeline_mode<synchronous>, transform_indices = @transform_2, window_bounds = array<i64: 1, 128>}, {pipeline_mode = #tpu.pipeline_mode<synchronous>, transform_indices = @transform_3, window_bounds = array<i64: 128, 128>}, {pipeline_mode = #tpu.pipeline_mode<synchronous>, transform_indices = @transform_4, window_bounds = array<i64: 1, 128>}, {transform_indices = @transform_5, window_bounds = array<i64: 8, 128>}]} {
    %c0_i32 = arith.constant 0 : i32
    %0 = arith.cmpi eq, %arg1, %c0_i32 : i32
    %1 = arith.extui %0 : i1 to i32
    %c0_i32_0 = arith.constant 0 : i32
    %2 = arith.cmpi ne, %1, %c0_i32_0 : i32
    scf.if %2 {
      %c0_10 = arith.constant 0 : index
      %c0_11 = arith.constant 0 : index
      %12 = vector.load %arg2[%c0_10, %c0_11] : memref<8x128xf32, #tpu.memory_space<vmem>>, vector<8x128xf32>
      %cst_12 = arith.constant dense<0.000000e+00> : vector<8xf32>
      %13 = vector.multi_reduction <add>, %12, %cst_12 [1] : vector<8x128xf32> to vector<8xf32>
      %14 = vector.shape_cast %13 : vector<8xf32> to vector<8x1xf32>
      %cst_13 = arith.constant 3.125000e-02 : f32
      %15 = vector.broadcast %cst_13 : f32 to vector<8x1xf32>
      %16 = arith.mulf %14, %15 : vector<8x1xf32>
      %17 = arith.mulf %12, %12 : vector<8x128xf32>
      %cst_14 = arith.constant dense<0.000000e+00> : vector<8xf32>
      %18 = vector.multi_reduction <add>, %17, %cst_14 [1] : vector<8x128xf32> to vector<8xf32>
      %19 = vector.shape_cast %18 : vector<8xf32> to vector<8x1xf32>
      %cst_15 = arith.constant 3.125000e-02 : f32
      %20 = vector.broadcast %cst_15 : f32 to vector<8x1xf32>
      %21 = arith.mulf %19, %20 : vector<8x1xf32>
      %22 = arith.mulf %16, %16 : vector<8x1xf32>
      %23 = arith.subf %21, %22 : vector<8x1xf32>
      %cst_16 = arith.constant 0.000000e+00 : f32
      %24 = vector.broadcast %cst_16 : f32 to vector<8x1xf32>
      %25 = arith.maximumf %23, %24 : vector<8x1xf32>
      %26 = vector.broadcast %16 : vector<8x1xf32> to vector<8x128xf32>
      %27 = arith.subf %12, %26 : vector<8x128xf32>
      %cst_17 = arith.constant 9.99999996E-13 : f32
      %28 = vector.broadcast %cst_17 : f32 to vector<8x1xf32>
      %29 = arith.addf %25, %28 : vector<8x1xf32>
      %30 = math.rsqrt %29 : vector<8x1xf32>
      %31 = vector.broadcast %30 : vector<8x1xf32> to vector<8x128xf32>
      %32 = arith.mulf %27, %31 : vector<8x128xf32>
      %c0_18 = arith.constant 0 : index
      %c0_19 = arith.constant 0 : index
      %33 = vector.load %arg3[%c0_18, %c0_19] : memref<1x128xf32, #tpu.memory_space<vmem>>, vector<1x128xf32>
      %34 = vector.broadcast %33 : vector<1x128xf32> to vector<8x128xf32>
      %35 = arith.mulf %32, %34 : vector<8x128xf32>
      %c0_20 = arith.constant 0 : index
      %c0_21 = arith.constant 0 : index
      %36 = vector.load %arg4[%c0_20, %c0_21] : memref<1x128xf32, #tpu.memory_space<vmem>>, vector<1x128xf32>
      %37 = vector.broadcast %36 : vector<1x128xf32> to vector<8x128xf32>
      %38 = arith.addf %35, %37 : vector<8x128xf32>
      %c0_22 = arith.constant 0 : index
      %c0_23 = arith.constant 0 : index
      %39 = vector.load %arg8[%c0_22, %c0_23] : memref<8x128xf32, #tpu.memory_space<vmem>>, vector<8x128xf32>
      tpu.vector_store %arg8[%c0_22, %c0_23], %38 {strides = array<i32>} : memref<8x128xf32, #tpu.memory_space<vmem>>, vector<8x128xf32>,
    } else {
    }
    %c0 = arith.constant 0 : index
    %c0_1 = arith.constant 0 : index
    %3 = vector.load %arg8[%c0, %c0_1] : memref<8x128xf32, #tpu.memory_space<vmem>>, vector<8x128xf32>
    %c0_2 = arith.constant 0 : index
    %c0_3 = arith.constant 0 : index
    %4 = vector.load %arg5[%c0_2, %c0_3] : memref<128x128xf32, #tpu.memory_space<vmem>>, vector<128x128xf32>
    %cst = arith.constant dense<0.000000e+00> : vector<8x128xf32>
    %5 = tpu.matmul %3, %4, %cst {dimension_numbers = #tpu.dot_dimension_numbers<[1], [0], [0], [1], [0, 0, 1, 1], [], []>} : vector<8x128xf32>, vector<128x128xf32>, vector<8x128xf32> -> vector<8x128xf32>
    %c0_4 = arith.constant 0 : index
    %c0_5 = arith.constant 0 : index
    %6 = vector.load %arg6[%c0_4, %c0_5] : memref<1x128xf32, #tpu.memory_space<vmem>>, vector<1x128xf32>
    %7 = vector.broadcast %6 : vector<1x128xf32> to vector<8x128xf32>
    %8 = arith.addf %5, %7 : vector<8x128xf32>
    %c0_6 = arith.constant 0 : index
    %c0_7 = arith.constant 0 : index
    %9 = vector.load %arg2[%c0_6, %c0_7] : memref<8x128xf32, #tpu.memory_space<vmem>>, vector<8x128xf32>
    %10 = arith.addf %9, %8 : vector<8x128xf32>
    %c0_8 = arith.constant 0 : index
    %c0_9 = arith.constant 0 : index
    %11 = vector.load %arg7[%c0_8, %c0_9] : memref<8x128xf32, #tpu.memory_space<vmem>>, vector<8x128xf32>
    tpu.vector_store %arg7[%c0_8, %c0_9], %10 {strides = array<i32>} : memref<8x128xf32, #tpu.memory_space<vmem>>, vector<8x128xf32>,
    return
  }
  func.func @transform_0(%arg0: i32, %arg1: i32) -> (i32, i32) {
    %c0_i32 = arith.constant 0 : i32
    %c0_i32_0 = arith.constant 0 : i32
    return %arg0, %c0_i32 : i32, i32
  }
  func.func @transform_1(%arg0: i32, %arg1: i32) -> (i32, i32) {
    %c0_i32 = arith.constant 0 : i32
    %c0_i32_0 = arith.constant 0 : i32
    %c0_i32_1 = arith.constant 0 : i32
    return %c0_i32, %c0_i32_0 : i32, i32
  }
  func.func @transform_2(%arg0: i32, %arg1: i32) -> (i32, i32) {
    %c0_i32 = arith.constant 0 : i32
    %c0_i32_0 = arith.constant 0 : i32
    %c0_i32_1 = arith.constant 0 : i32
    return %c0_i32, %c0_i32_0 : i32, i32
  }
  func.func @transform_3(%arg0: i32, %arg1: i32) -> (i32, i32) {
    %c0_i32 = arith.constant 0 : i32
    %c0_i32_0 = arith.constant 0 : i32
    return %c0_i32, %arg1 : i32, i32
  }
  func.func @transform_4(%arg0: i32, %arg1: i32) -> (i32, i32) {
    %c0_i32 = arith.constant 0 : i32
    %c0_i32_0 = arith.constant 0 : i32
    return %c0_i32, %arg1 : i32, i32
  }
  func.func @transform_5(%arg0: i32, %arg1: i32) -> (i32, i32) {
    %c0_i32 = arith.constant 0 : i32
    return %arg0, %arg1 : i32, i32
  }
}

module attributes {stable_mosaic.version = 11 : i64} {
  func.func @_norm_linear_residual_kernel(%arg0: i32, %arg1: i32, %arg2: memref<8x128xf32, #tpu.memory_space<vmem>>, %arg3: memref<1x128xf32, #tpu.memory_space<vmem>>, %arg4: memref<1x128xf32, #tpu.memory_space<vmem>>, %arg5: memref<128x128xf32, #tpu.memory_space<vmem>>, %arg6: memref<1x128xf32, #tpu.memory_space<vmem>>, %arg7: memref<8x128xf32, #tpu.memory_space<vmem>>, %arg8: memref<8x128xf32, #tpu.memory_space<vmem>>) attributes {dimension_semantics = [#tpu.dimension_semantics<parallel>, #tpu.dimension_semantics<arbitrary>], iteration_bounds = array<i64: 2, 1>, scalar_prefetch = 0 : i64, scratch_operands = 1 : i64, tpu.core_type = #tpu.core_type<tc>, window_params = [{transform_indices = @transform_0, window_bounds = array<i64: 8, 128>}, {pipeline_mode = #tpu.pipeline_mode<synchronous>, transform_indices = @transform_1, window_bounds = array<i64: 1, 128>}, {pipeline_mode = #tpu.pipeline_mode<synchronous>, transform_indices = @transform_2, window_bounds = array<i64: 1, 128>}, {transform_indices = @transform_3, window_bounds = array<i64: 128, 128>}, {transform_indices = @transform_4, window_bounds = array<i64: 1, 128>}, {transform_indices = @transform_5, window_bounds = array<i64: 8, 128>}]} {
    %c0_i32 = arith.constant 0 : i32
    %0 = arith.cmpi eq, %arg1, %c0_i32 : i32
    %1 = arith.extui %0 : i1 to i32
    %c0_i32_0 = arith.constant 0 : i32
    %2 = arith.cmpi ne, %1, %c0_i32_0 : i32
    scf.if %2 {
      %c0_10 = arith.constant 0 : index
      %c0_11 = arith.constant 0 : index
      %12 = vector.load %arg2[%c0_10, %c0_11] : memref<8x128xf32, #tpu.memory_space<vmem>>, vector<8x128xf32>
      %cst_12 = arith.constant dense<0.000000e+00> : vector<8xf32>
      %13 = vector.multi_reduction <add>, %12, %cst_12 [1] : vector<8x128xf32> to vector<8xf32>
      %14 = vector.shape_cast %13 : vector<8xf32> to vector<8x1xf32>
      %cst_13 = arith.constant 3.125000e-02 : f32
      %15 = vector.broadcast %cst_13 : f32 to vector<8x1xf32>
      %16 = arith.mulf %14, %15 : vector<8x1xf32>
      %17 = arith.mulf %12, %12 : vector<8x128xf32>
      %cst_14 = arith.constant dense<0.000000e+00> : vector<8xf32>
      %18 = vector.multi_reduction <add>, %17, %cst_14 [1] : vector<8x128xf32> to vector<8xf32>
      %19 = vector.shape_cast %18 : vector<8xf32> to vector<8x1xf32>
      %cst_15 = arith.constant 3.125000e-02 : f32
      %20 = vector.broadcast %cst_15 : f32 to vector<8x1xf32>
      %21 = arith.mulf %19, %20 : vector<8x1xf32>
      %22 = arith.mulf %16, %16 : vector<8x1xf32>
      %23 = arith.subf %21, %22 : vector<8x1xf32>
      %cst_16 = arith.constant 0.000000e+00 : f32
      %24 = vector.broadcast %cst_16 : f32 to vector<8x1xf32>
      %25 = arith.maximumf %23, %24 : vector<8x1xf32>
      %26 = vector.broadcast %16 : vector<8x1xf32> to vector<8x128xf32>
      %27 = arith.subf %12, %26 : vector<8x128xf32>
      %cst_17 = arith.constant 9.99999996E-13 : f32
      %28 = vector.broadcast %cst_17 : f32 to vector<8x1xf32>
      %29 = arith.addf %25, %28 : vector<8x1xf32>
      %30 = math.rsqrt %29 : vector<8x1xf32>
      %31 = vector.broadcast %30 : vector<8x1xf32> to vector<8x128xf32>
      %32 = arith.mulf %27, %31 : vector<8x128xf32>
      %c0_18 = arith.constant 0 : index
      %c0_19 = arith.constant 0 : index
      %33 = vector.load %arg3[%c0_18, %c0_19] : memref<1x128xf32, #tpu.memory_space<vmem>>, vector<1x128xf32>
      %34 = vector.broadcast %33 : vector<1x128xf32> to vector<8x128xf32>
      %35 = arith.mulf %32, %34 : vector<8x128xf32>
      %c0_20 = arith.constant 0 : index
      %c0_21 = arith.constant 0 : index
      %36 = vector.load %arg4[%c0_20, %c0_21] : memref<1x128xf32, #tpu.memory_space<vmem>>, vector<1x128xf32>
      %37 = vector.broadcast %36 : vector<1x128xf32> to vector<8x128xf32>
      %38 = arith.addf %35, %37 : vector<8x128xf32>
      %c0_22 = arith.constant 0 : index
      %c0_23 = arith.constant 0 : index
      %39 = vector.load %arg8[%c0_22, %c0_23] : memref<8x128xf32, #tpu.memory_space<vmem>>, vector<8x128xf32>
      tpu.vector_store %arg8[%c0_22, %c0_23], %38 {strides = array<i32>} : memref<8x128xf32, #tpu.memory_space<vmem>>, vector<8x128xf32>,
    } else {
    }
    %c0 = arith.constant 0 : index
    %c0_1 = arith.constant 0 : index
    %3 = vector.load %arg8[%c0, %c0_1] : memref<8x128xf32, #tpu.memory_space<vmem>>, vector<8x128xf32>
    %c0_2 = arith.constant 0 : index
    %c0_3 = arith.constant 0 : index
    %4 = vector.load %arg5[%c0_2, %c0_3] : memref<128x128xf32, #tpu.memory_space<vmem>>, vector<128x128xf32>
    %cst = arith.constant dense<0.000000e+00> : vector<8x128xf32>
    %5 = tpu.matmul %3, %4, %cst {dimension_numbers = #tpu.dot_dimension_numbers<[1], [0], [0], [1], [0, 0, 1, 1], [], []>} : vector<8x128xf32>, vector<128x128xf32>, vector<8x128xf32> -> vector<8x128xf32>
    %c0_4 = arith.constant 0 : index
    %c0_5 = arith.constant 0 : index
    %6 = vector.load %arg6[%c0_4, %c0_5] : memref<1x128xf32, #tpu.memory_space<vmem>>, vector<1x128xf32>
    %7 = vector.broadcast %6 : vector<1x128xf32> to vector<8x128xf32>
    %8 = arith.addf %5, %7 : vector<8x128xf32>
    %c0_6 = arith.constant 0 : index
    %c0_7 = arith.constant 0 : index
    %9 = vector.load %arg2[%c0_6, %c0_7] : memref<8x128xf32, #tpu.memory_space<vmem>>, vector<8x128xf32>
    %10 = arith.addf %9, %8 : vector<8x128xf32>
    %c0_8 = arith.constant 0 : index
    %c0_9 = arith.constant 0 : index
    %11 = vector.load %arg7[%c0_8, %c0_9] : memref<8x128xf32, #tpu.memory_space<vmem>>, vector<8x128xf32>
    tpu.vector_store %arg7[%c0_8, %c0_9], %10 {strides = array<i32>} : memref<8x128xf32, #tpu.memory_space<vmem>>, vector<8x128xf32>,
    return
  }
  func.func @transform_0(%arg0: i32, %arg1: i32) -> (i32, i32) {
    %c0_i32 = arith.constant 0 : i32
    %c0_i32_0 = arith.constant 0 : i32
    return %arg0, %c0_i32 : i32, i32
  }
  func.func @transform_1(%arg0: i32, %arg1: i32) -> (i32, i32) {
    %c0_i32 = arith.constant 0 : i32
    %c0_i32_0 = arith.constant 0 : i32
    %c0_i32_1 = arith.constant 0 : i32
    return %c0_i32, %c0_i32_0 : i32, i32
  }
  func.func @transform_2(%arg0: i32, %arg1: i32) -> (i32, i32) {
    %c0_i32 = arith.constant 0 : i32
    %c0_i32_0 = arith.constant 0 : i32
    %c0_i32_1 = arith.constant 0 : i32
    return %c0_i32, %c0_i32_0 : i32, i32
  }
  func.func @transform_3(%arg0: i32, %arg1: i32) -> (i32, i32) {
    %c0_i32 = arith.constant 0 : i32
    %c0_i32_0 = arith.constant 0 : i32
    return %c0_i32, %arg1 : i32, i32
  }
  func.func @transform_4(%arg0: i32, %arg1: i32) -> (i32, i32) {
    %c0_i32 = arith.constant 0 : i32
    %c0_i32_0 = arith.constant 0 : i32
    return %c0_i32, %arg1 : i32, i32
  }
  func.func @transform_5(%arg0: i32, %arg1: i32) -> (i32, i32) {
    %c0_i32 = arith.constant 0 : i32
    return %arg0, %arg1 : i32, i32
  }
}

</mosaic_0001>

<bundles_post_ra>
// kernel: tpu_custom_call.1
= control target key start
LH: loop header
LB: loop body
LE: loop exit
PB: predicated region body
PF: predicated region fallthrough
CT: control target
= control target key end

     0   :  { %10 = vsyncpa [#allocation4], 0  ;;  %s1003_s0 = inlined_call_operand.hbm [shape: f32[16,128], index: 0, kind: input, shape index: {}]   ;;  %s1004_s1 = inlined_call_operand.hbm [shape: f32[1,128], index: 1, kind: input, shape index: {}]   ;;  %s1005_s2 = inlined_call_operand.vmem [shape: f32[1,128], index: 2, kind: input, shape index: {}]   ;;  %s1006_s3 = inlined_call_operand.hbm [shape: f32[128,128], index: 3, kind: input, shape index: {}]   ;;  %s1007_s4 = inlined_call_operand.vmem [shape: f32[1,128], index: 4, kind: input, shape index: {}]   ;;  %s1008_s5 = inlined_call_operand.hbm [shape: f32[16,128], index: 5, kind: output, shape index: {}]  }
   0x1   :  { %12 = vsyncpa [#allocation4 + $0x1], 0 }
   0x2   :  { %13 = vsyncpa [#allocation7], 0 }
   0x3   :  { %14 = vsyncpa [#allocation5], 0 }
   0x4   :  { %16 = vsyncpa [#allocation5 + $0x1], 0  ;;  %s840_s18 = smov 0   ;;  %s842_s19 = smov 0  }
   0x5   :  { %s844_s20 = smov 0   ;;  %s846_s21 = smov 0  }
   0x6   :  { %s848_s22 = smov 0   ;;  %s850_s23 = smov 0  }
   0x7 LB: > { %s520_s24 = sadd.s32 4294967295, %s804_s23   ;;  %s521_s25 = sadd.s32 4294967294, %s804_s23   ;;  %s804_s23 = sphi %s850_s23, %s22_s23   ;;  %s800_s22 = sphi %s848_s22, %s1018_s22   ;;  %s796_s21 = sphi %s846_s21, %s1017_s21   ;;  %s792_s20 = sphi %s844_s20, %s1016_s20   ;;  %s788_s19 = sphi %s842_s19, %s1015_s19   ;;  %s784_s18 = sphi %s840_s18, %s1014_s18  }
   0x8   : > { %p54_p0 = scmp.ne.s32.totalorder %s788_s19, %s784_s18  ;;  %p876_p1 = scmp.eq.s32.totalorder %s520_s24, 0 }
   0x9   : > { %p180_p2 = scmp.eq.s32.totalorder %s521_s25, 1  ;;  %p522_p4 = scmp.ge.s32.totalorder %s804_s23, 1 }
   0xa   : > { %p882_p3 = por %p876_p1, %p54_p0  ;;  %p187_p6 = scmp.lt.s32.totalorder %s804_s23, 3 }
   0xb   : > { %p887_p5 = por %p180_p2, %p54_p0  ;;  %s199_s6 = sshll.u32 %s1004_s1, 4  ;;  %s200_s6 = int_to_ptr.hbm [resolvable:$true] %s199_s6 }
   0xc   : > { %p895_p7 = pnand %p522_p4, %p187_p6  ;;  %p526_p8 = scmp.ge.s32.totalorder %s804_s23, 2 }
   0xd   : > { %s806_s8 = smov [#allocation6]   ;;  %s215_s12 = sshll.u32 %s1006_s3, 4  ;;  %s216_s12 = int_to_ptr.hbm [resolvable:$true] %s215_s12 }
   0xe   : > { %p550_p9 = pneg %p895_p7  ;;  %s201_s9 = sshll.u32 %s806_s8, 4  ;;  %s202_s9 = int_to_ptr.vmem [resolvable:$true] %s201_s9 }
   0xf   : > { %s807_s13 = smov [#allocation8]   ;;  %s808_s15 = smov 128  }
  0x10   : > { %p551_p10 = pnand %p550_p9, %p876_p1  ;;  %s217_s14 = sshll.u32 %s807_s13, 4  ;;  %s218_s14 = int_to_ptr.vmem [resolvable:$true] %s217_s14 }
  0x11   : > { %s809_s16 = smov 8   ;;  %p174_p11 = scmp.eq.s32.totalorder %s520_s24, 1 }
  0x12   : > { %553 = dma.hbm_to_vmem [thread:$0]  (!%p551_p10), %s200_s6, 16, %s202_s9, [#allocation7]  }
  0x13   : > { %556 = dma.hbm_to_vmem [thread:$0]  (!%p551_p10), %s216_s12, 2048, %s218_s14, [#allocation7], %s808_s15, %s808_s15, %s809_s16  }
  0x14   : > { %s34_s17 = sadd.s32 1, %s800_s22  ;;  %s41_s25 = sadd.s32 1, %s792_s20 }
  0x15   : > { %p36_p12 = scmp.ge.s32.totalorder %s34_s17, 2  ;;  %p48_p13 = scmp.ne.s32.totalorder %s792_s20, %s788_s19 }
  0x16   : > { %p49_p0 = scmp.eq.s32.totalorder %s804_s23, 0  ;;  %p567_p4 = scmp.lt.s32.totalorder %s804_s23, 2 }
  0x17   : > { %s1020_s17 = smov (%p36_p12, %s34_s17), 0  ;;  %p916_p2 = por %p174_p11, %p48_p13 }
  0x18   : > { %s38_s30 = ssub.s32 %s800_s22, %s1020_s17  ;;  %s237_s6 = sand.u32 1, %s792_s20  }
  0x19   : > { %p39_p6 = scmp.eq.s32.totalorder %s38_s30, 0  ;;  %p50_p9 = por %p49_p0, %p48_p13 }
  0x1a   : > { %s527_s8 = sshll.u32 %s237_s6, 3  ;;  %s528_s24 = sshll.u32 %s800_s22, 3 }
  0x1b   : > { %s926_s9 = scalar_select %p39_p6, %s792_s20, %s41_s25  }
  0x1c   : > { %s245_s12 = scalar_lea.hbm %s1003_s0, %s528_s24  ;;  %s241_s14 = scalar_lea.vmem [#allocation3], %s527_s8 }
  0x1d   : > { %s247_s13 = sshll.u32 %s245_s12, 4  ;;  %s249_s15 = sshll.u32 %s241_s14, 4  ;;  %s248_s13 = int_to_ptr.hbm [resolvable:$true] %s247_s13  ;;  %s250_s15 = int_to_ptr.vmem [resolvable:$true] %s249_s15 }
  0x1e   : > { %p558_p10 = pnand %p567_p4, %p50_p9  ;;  %s238_s16 = scalar_lea.sflag [#allocation4], %s237_s6 }
  0x1f   : > { %258 = sbr.rel (%p895_p7) target bundleno = 329 (0x149), region = 40  ;;  %s936_s25 = sand.u32 (!%p895_p7), 1, %s788_s19  }
  0x20   : > { %560 = dma.hbm_to_vmem [thread:$0]  (!%p558_p10), %s248_s13, 128, %s250_s15, %s238_s16  }
  0x21   : > { %s530_s30 = sshll.u32 (!%p895_p7), %s936_s25, 3  ;;  %s261_s24 = scalar_lea.sflag (!%p895_p7), [#allocation4], %s936_s25 }
  0x22   : > { %s264_s8 = scalar_lea.vmem (!%p895_p7), [#allocation3], %s530_s30 }
  0x24   : > { %771 = dma.done.wait (%p882_p3), %s261_s24, 128  }
  0x25   : > { %773 = vsyncadd (%p882_p3), %s261_s24, 4294967168 }
  0x26   : > { %775 = dma.done.wait (%p876_p1), [#allocation7], 2064  }
  0x27   : > { %777 = vsyncadd (%p876_p1), [#allocation7], 4294965232  ;;  %v950_v0 = vld [vmem:[%s264_s8] sm:$0xff]  ;;  %v360_v5 = vld [vmem:[#allocation8 + $0x60] sm:$0xff]  ;;  %s535_s7 = sshll.u32 %s796_s21, 3  ;;  %s304_s14 = scalar_lea.vmem [#allocation9], %s530_s30 }
  0x28   : > { %313 = vadd.xlane.f32.xlu0 %v950_v0  ;;  %v316_v1 = vmul.f32 %v950_v0, %v950_v0  ;;  %v363_v2 = vld [vmem:[#allocation8 + $0x78] sm:$0xff]  ;;  %v362_v3 = vld [vmem:[#allocation8 + $0x70] sm:$0xff]  ;;  %v361_v4 = vld [vmem:[#allocation8 + $0x68] sm:$0xff]  ;;  %s403_s13 = scalar_lea.hbm %s1008_s5, %s535_s7  ;;  %s405_s15 = sshll.u32 %s304_s14, 4  ;;  %s406_s15 = int_to_ptr.vmem [resolvable:$true] %s405_s15 }
  0x29   : > { %368 = vmatpush.msra.mxu0 %v363_v2  ;;  %v359_v6 = vld [vmem:[#allocation8 + $0x58] sm:$0xff]  ;;  %v358_v7 = vld [vmem:[#allocation8 + $0x50] sm:$0xff]  ;;  %v357_v8 = vld [vmem:[#allocation8 + $0x48] sm:$0xff]  ;;  %s407_s16 = sshll.u32 %s403_s13, 4  ;;  %s392_s21 = scalar_lea.sflag [#allocation5], %s936_s25  ;;  %s408_s16 = int_to_ptr.hbm [resolvable:$true] %s407_s16 }
  0x2a   : > { %v356_v9 = vld [vmem:[#allocation8 + $0x40] sm:$0xff]  ;;  %v355_v10 = vld [vmem:[#allocation8 + $0x38] sm:$0xff]  ;;  %v354_v11 = vld [vmem:[#allocation8 + $0x30] sm:$0xff]  ;;  %s732_s24 = sshra.s32 %s408_s16, 4  ;;  %s738_s30 = scalar_lea.hbm %s1008_s5, 16  ;;  %s733_s24 = int_to_ptr.hbm [resolvable:$true] %s732_s24 }
  0x2b   : > { %369 = vmatpush.msra.mxu0 %v362_v3  ;;  %v353_v12 = vld [vmem:[#allocation8 + $0x28] sm:$0xff]  ;;  %v352_v13 = vld [vmem:[#allocation8 + $0x20] sm:$0xff]  ;;  %v351_v14 = vld [vmem:[#allocation8 + $0x18] sm:$0xff]  ;;  %s734_s8 = scalar_lea.hbm %s733_s24, 8  ;;  %p739_p11 = scmp.lt.s32.totalorder %s733_s24, %s1008_s5 }
  0x2c   : > { %v350_v16 = vld [vmem:[#allocation8 + $0x10] sm:$0xff]  ;;  %v349_v17 = vld [vmem:[#allocation8 + $0x8] sm:$0xff]  ;;  %v348_v19 = vld [vmem:[#allocation8] sm:$0xff]  ;;  %p735_p1 = scmp.ne.s32.totalorder %s733_s24, %s734_s8  ;;  %p740_p12 = scmp.lt.s32.totalorder %s738_s30, %s734_s8 }
  0x2d   : > { %370 = vmatpush.msra.mxu0 %v361_v4  ;;  %v623_v33 = vld [vmem:[#allocation6] ss:$0 sm:$0xff]  ;;  %v624_v36 = vld [vmem:[%s1005_s2] ss:$0 sm:$0xff] }
  0x2e   : > { %v625_v39 = vld [vmem:[%s1007_s4] ss:$0 sm:$0xff]  ;;  %p736_p3 = pnand %p735_p1, %p916_p2  ;;  %p741_p13 = por %p740_p12, %p739_p11 }
  0x2f   : > { %371 = vmatpush.msra.mxu0 %v360_v5 }
  0x30   : > { %317 = vadd.xlane.f32.xlu0 %v316_v1  ;;  %p737_p7 = pneg %p736_p3 }
  0x31   : > { %372 = vmatpush.msra.mxu0 %v359_v6 }
  0x32   : > { %p742_p0 = pnand %p741_p13, %p737_p7 }
  0x33   : > { %373 = vmatpush.msra.mxu0 %v358_v7 }
  0x35   : > { %374 = vmatpush.msra.mxu0 %v357_v8 }
  0x37   : > { %375 = vmatpush.msra.mxu0 %v356_v9 }
  0x39   : > { %376 = vmatpush.msra.mxu0 %v355_v10 }
  0x3b   : > { %377 = vmatpush.msra.mxu0 %v354_v11 }
  0x3d   : > { %378 = vmatpush.msra.mxu0 %v353_v12 }
  0x3f   : > { %379 = vmatpush.msra.mxu0 %v352_v13 }
  0x41   : > { %380 = vmatpush.msra.mxu0 %v351_v14 }
  0x43   : > { %381 = vmatpush.msra.mxu0 %v350_v16 }
  0x45   : > { %382 = vmatpush.msra.mxu0 %v349_v17 }
  0x47   : > { %383 = vmatpush.msra.mxu0 %v348_v19 }
  0x9b   : > { %v314_v15 = vpop.xlane.xlu0 %313 }
  0x9c   : > { %v315_v18 = vmul.f32 0.03125, %v314_v15 }
  0x9e   : > { %v320_v21 = vmul.f32 %v315_v18, %v315_v18  ;;  %v323_v32 = vsub.f32 %v950_v0, %v315_v18 }
  0xa3   : > { %v318_v20 = vpop.xlane.xlu0 %317 }
  0xa4   : > { %v319_v22 = vmul.f32 0.03125, %v318_v20 }
  0xa6   : > { %v321_v23 = vsub.f32 %v319_v22, %v320_v21 }
  0xa8   : > { %v322_v24 = vmax.f32 %v321_v23, 0.0 }
  0xaa   : > { %v324_v25 = vadd.f32 1e-12, %v322_v24 }
  0xac   : > { %626 = vrsqrt.f32 %v324_v25  ;;  %vm331_vm1 = vweird.f32 %v324_v25 }
  0xb2   : > { %v627_v26 = vpop.eup %626 }
  0xb3   : > { %v326_v27 = vmul.f32 %v627_v26, %v324_v25  ;;  %vm332_vm0 = vweird.f32 %v627_v26 }
  0xb4   : > { %vm333_vm2 = vmor %vm331_vm1, %vm332_vm0 }
  0xb5   : > { %v327_v28 = vmul.f32 %v627_v26, %v326_v27 }
  0xb7   : > { %v328_v29 = vmul.f32 0.5, %v327_v28 }
  0xb9   : > { %v329_v30 = vsub.f32 1.5, %v328_v29 }
  0xbb   : > { %v330_v31 = vmul.f32 %v627_v26, %v329_v30 }
  0xbd   : > { %v334_v34 = vsel %vm333_vm2, %v627_v26, %v330_v31 }
  0xbe   : > { %v335_v35 = vmul.f32 %v334_v34, %v323_v32 }
  0xc0   : > { %v340_v37 = vmul.f32 %v623_v33, %v335_v35 }
  0xc2   : > { %v345_v38 = vadd.f32 %v624_v36, %v340_v37 }
  0xc4   : > { %384 = vmatmul.f32.vlgmr.msra.gmra.mxu0 %v345_v38 }
 0x141   : > { %v385_v40 = vpop.f32.mrf.mxu0 }
 0x142   : > { %v386_v41 = vadd.f32 %v625_v39, %v385_v40 }
 0x144   : > { %v389_v42 = vadd.f32 %v386_v41, %v950_v0 }
 0x146   : > { %390 = vst [vmem:[%s304_s14] sm:$0xff] %v389_v42 }
 0x147   : > { %745 = shalt.err (!%p742_p0)
}
 0x148   : > { %548 = dma.vmem_to_hbm [thread:$0]  (%p916_p2), %s406_s15, 128, %s408_s16, %s392_s21  }
 0x149 PF: > { %s419_s25 = sand.u32 1, %s784_s18   ;;  %p562_p4 = pnand %p526_p8, %p887_p5 }
 0x14a   : > { %s420_s10 = scalar_lea.sflag [#allocation5], %s419_s25 }
 0x14b   : > { %p563_p6 = pneg %p562_p4 }
 0x14d   : > { %779 = dma.done.wait (%p563_p6), %s420_s10, 128  }
 0x14e   : > { %781 = vsyncadd (%p563_p6), %s420_s10, 4294967168  ;;  %s22_s23 = sadd.s32 1, %s804_s23   ;;  %s1014_s18 = smov %s788_s19 }
 0x14f   : > { %p19_p9 = scmp.ge.s32.totalorder %s22_s23, 4   ;;  %s1015_s19 = smov %s792_s20 }
 0x150   : > { %s1016_s20 = smov %s926_s9  ;;  %s1017_s21 = smov %s800_s22 }
 0x151   : > { %s1018_s22 = smov %s1020_s17  ;;  %21 = sbr.rel (!%p19_p9) target bundleno = 7 (0x7), region = 101 }
 0x156   :  { %426 = vsyncpa [#allocation4], 1 }
 0x157   :  { %428 = vsyncpa [#allocation4 + $0x1], 1 }
 0x158   :  { %429 = vsyncpa [#allocation7], 1 }
 0x159   :  { %430 = vsyncpa [#allocation5], 1 }
 0x15a   :  { %432 = vsyncpa [#allocation5 + $0x1], 1 }

// kernel: tpu_custom_call.1
= control target key start
LH: loop header
LB: loop body
LE: loop exit
PB: predicated region body
PF: predicated region fallthrough
CT: control target
= control target key end

     0   :  { %10 = vsyncpa [#allocation4], 0  ;;  %s1003_s0 = inlined_call_operand.hbm [shape: f32[16,128], index: 0, kind: input, shape index: {}]   ;;  %s1004_s1 = inlined_call_operand.hbm [shape: f32[1,128], index: 1, kind: input, shape index: {}]   ;;  %s1005_s2 = inlined_call_operand.vmem [shape: f32[1,128], index: 2, kind: input, shape index: {}]   ;;  %s1006_s3 = inlined_call_operand.hbm [shape: f32[128,128], index: 3, kind: input, shape index: {}]   ;;  %s1007_s4 = inlined_call_operand.vmem [shape: f32[1,128], index: 4, kind: input, shape index: {}]   ;;  %s1008_s5 = inlined_call_operand.hbm [shape: f32[16,128], index: 5, kind: output, shape index: {}]  }
   0x1   :  { %12 = vsyncpa [#allocation4 + $0x1], 0 }
   0x2   :  { %13 = vsyncpa [#allocation7], 0 }
   0x3   :  { %14 = vsyncpa [#allocation5], 0 }
   0x4   :  { %16 = vsyncpa [#allocation5 + $0x1], 0  ;;  %s840_s18 = smov 0   ;;  %s842_s19 = smov 0  }
   0x5   :  { %s844_s20 = smov 0   ;;  %s846_s21 = smov 0  }
   0x6   :  { %s848_s22 = smov 0   ;;  %s850_s23 = smov 0  }
   0x7 LB: > { %s520_s24 = sadd.s32 4294967295, %s804_s23   ;;  %s521_s25 = sadd.s32 4294967294, %s804_s23   ;;  %s804_s23 = sphi %s850_s23, %s22_s23   ;;  %s800_s22 = sphi %s848_s22, %s1018_s22   ;;  %s796_s21 = sphi %s846_s21, %s1017_s21   ;;  %s792_s20 = sphi %s844_s20, %s1016_s20   ;;  %s788_s19 = sphi %s842_s19, %s1015_s19   ;;  %s784_s18 = sphi %s840_s18, %s1014_s18  }
   0x8   : > { %p54_p0 = scmp.ne.s32.totalorder %s788_s19, %s784_s18  ;;  %p876_p1 = scmp.eq.s32.totalorder %s520_s24, 0 }
   0x9   : > { %p180_p2 = scmp.eq.s32.totalorder %s521_s25, 1  ;;  %p522_p4 = scmp.ge.s32.totalorder %s804_s23, 1 }
   0xa   : > { %p882_p3 = por %p876_p1, %p54_p0  ;;  %p187_p6 = scmp.lt.s32.totalorder %s804_s23, 3 }
   0xb   : > { %p887_p5 = por %p180_p2, %p54_p0  ;;  %s199_s6 = sshll.u32 %s1004_s1, 4  ;;  %s200_s6 = int_to_ptr.hbm [resolvable:$true] %s199_s6 }
   0xc   : > { %p895_p7 = pnand %p522_p4, %p187_p6  ;;  %p526_p8 = scmp.ge.s32.totalorder %s804_s23, 2 }
   0xd   : > { %s806_s8 = smov [#allocation6]   ;;  %s215_s12 = sshll.u32 %s1006_s3, 4  ;;  %s216_s12 = int_to_ptr.hbm [resolvable:$true] %s215_s12 }
   0xe   : > { %p550_p9 = pneg %p895_p7  ;;  %s201_s9 = sshll.u32 %s806_s8, 4  ;;  %s202_s9 = int_to_ptr.vmem [resolvable:$true] %s201_s9 }
   0xf   : > { %s807_s13 = smov [#allocation8]   ;;  %s808_s15 = smov 128  }
  0x10   : > { %p551_p10 = pnand %p550_p9, %p876_p1  ;;  %s217_s14 = sshll.u32 %s807_s13, 4  ;;  %s218_s14 = int_to_ptr.vmem [resolvable:$true] %s217_s14 }
  0x11   : > { %s809_s16 = smov 8   ;;  %p174_p11 = scmp.eq.s32.totalorder %s520_s24, 1 }
  0x12   : > { %553 = dma.hbm_to_vmem [thread:$0]  (!%p551_p10), %s200_s6, 16, %s202_s9, [#allocation7]  }
  0x13   : > { %556 = dma.hbm_to_vmem [thread:$0]  (!%p551_p10), %s216_s12, 2048, %s218_s14, [#allocation7], %s808_s15, %s808_s15, %s809_s16  }
  0x14   : > { %s34_s17 = sadd.s32 1, %s800_s22  ;;  %s41_s25 = sadd.s32 1, %s792_s20 }
  0x15   : > { %p36_p12 = scmp.ge.s32.totalorder %s34_s17, 2  ;;  %p48_p13 = scmp.ne.s32.totalorder %s792_s20, %s788_s19 }
  0x16   : > { %p49_p0 = scmp.eq.s32.totalorder %s804_s23, 0  ;;  %p567_p4 = scmp.lt.s32.totalorder %s804_s23, 2 }
  0x17   : > { %s1020_s17 = smov (%p36_p12, %s34_s17), 0  ;;  %p916_p2 = por %p174_p11, %p48_p13 }
  0x18   : > { %s38_s30 = ssub.s32 %s800_s22, %s1020_s17  ;;  %s237_s6 = sand.u32 1, %s792_s20  }
  0x19   : > { %p39_p6 = scmp.eq.s32.totalorder %s38_s30, 0  ;;  %p50_p9 = por %p49_p0, %p48_p13 }
  0x1a   : > { %s527_s8 = sshll.u32 %s237_s6, 3  ;;  %s528_s24 = sshll.u32 %s800_s22, 3 }
  0x1b   : > { %s926_s9 = scalar_select %p39_p6, %s792_s20, %s41_s25  }
  0x1c   : > { %s245_s12 = scalar_lea.hbm %s1003_s0, %s528_s24  ;;  %s241_s14 = scalar_lea.vmem [#allocation3], %s527_s8 }
  0x1d   : > { %s247_s13 = sshll.u32 %s245_s12, 4  ;;  %s249_s15 = sshll.u32 %s241_s14, 4  ;;  %s248_s13 = int_to_ptr.hbm [resolvable:$true] %s247_s13  ;;  %s250_s15 = int_to_ptr.vmem [resolvable:$true] %s249_s15 }
  0x1e   : > { %p558_p10 = pnand %p567_p4, %p50_p9  ;;  %s238_s16 = scalar_lea.sflag [#allocation4], %s237_s6 }
  0x1f   : > { %258 = sbr.rel (%p895_p7) target bundleno = 329 (0x149), region = 40  ;;  %s936_s25 = sand.u32 (!%p895_p7), 1, %s788_s19  }
  0x20   : > { %560 = dma.hbm_to_vmem [thread:$0]  (!%p558_p10), %s248_s13, 128, %s250_s15, %s238_s16  }
  0x21   : > { %s530_s30 = sshll.u32 (!%p895_p7), %s936_s25, 3  ;;  %s261_s24 = scalar_lea.sflag (!%p895_p7), [#allocation4], %s936_s25 }
  0x22   : > { %s264_s8 = scalar_lea.vmem (!%p895_p7), [#allocation3], %s530_s30 }
  0x24   : > { %771 = dma.done.wait (%p882_p3), %s261_s24, 128  }
  0x25   : > { %773 = vsyncadd (%p882_p3), %s261_s24, 4294967168 }
  0x26   : > { %775 = dma.done.wait (%p876_p1), [#allocation7], 2064  }
  0x27   : > { %777 = vsyncadd (%p876_p1), [#allocation7], 4294965232  ;;  %v950_v0 = vld [vmem:[%s264_s8] sm:$0xff]  ;;  %v360_v5 = vld [vmem:[#allocation8 + $0x60] sm:$0xff]  ;;  %s535_s7 = sshll.u32 %s796_s21, 3  ;;  %s304_s14 = scalar_lea.vmem [#allocation9], %s530_s30 }
  0x28   : > { %313 = vadd.xlane.f32.xlu0 %v950_v0  ;;  %v316_v1 = vmul.f32 %v950_v0, %v950_v0  ;;  %v363_v2 = vld [vmem:[#allocation8 + $0x78] sm:$0xff]  ;;  %v362_v3 = vld [vmem:[#allocation8 + $0x70] sm:$0xff]  ;;  %v361_v4 = vld [vmem:[#allocation8 + $0x68] sm:$0xff]  ;;  %s403_s13 = scalar_lea.hbm %s1008_s5, %s535_s7  ;;  %s405_s15 = sshll.u32 %s304_s14, 4  ;;  %s406_s15 = int_to_ptr.vmem [resolvable:$true] %s405_s15 }
  0x29   : > { %368 = vmatpush.msra.mxu0 %v363_v2  ;;  %v359_v6 = vld [vmem:[#allocation8 + $0x58] sm:$0xff]  ;;  %v358_v7 = vld [vmem:[#allocation8 + $0x50] sm:$0xff]  ;;  %v357_v8 = vld [vmem:[#allocation8 + $0x48] sm:$0xff]  ;;  %s407_s16 = sshll.u32 %s403_s13, 4  ;;  %s392_s21 = scalar_lea.sflag [#allocation5], %s936_s25  ;;  %s408_s16 = int_to_ptr.hbm [resolvable:$true] %s407_s16 }
  0x2a   : > { %v356_v9 = vld [vmem:[#allocation8 + $0x40] sm:$0xff]  ;;  %v355_v10 = vld [vmem:[#allocation8 + $0x38] sm:$0xff]  ;;  %v354_v11 = vld [vmem:[#allocation8 + $0x30] sm:$0xff]  ;;  %s732_s24 = sshra.s32 %s408_s16, 4  ;;  %s738_s30 = scalar_lea.hbm %s1008_s5, 16  ;;  %s733_s24 = int_to_ptr.hbm [resolvable:$true] %s732_s24 }
  0x2b   : > { %369 = vmatpush.msra.mxu0 %v362_v3  ;;  %v353_v12 = vld [vmem:[#allocation8 + $0x28] sm:$0xff]  ;;  %v352_v13 = vld [vmem:[#allocation8 + $0x20] sm:$0xff]  ;;  %v351_v14 = vld [vmem:[#allocation8 + $0x18] sm:$0xff]  ;;  %s734_s8 = scalar_lea.hbm %s733_s24, 8  ;;  %p739_p11 = scmp.lt.s32.totalorder %s733_s24, %s1008_s5 }
  0x2c   : > { %v350_v16 = vld [vmem:[#allocation8 + $0x10] sm:$0xff]  ;;  %v349_v17 = vld [vmem:[#allocation8 + $0x8] sm:$0xff]  ;;  %v348_v19 = vld [vmem:[#allocation8] sm:$0xff]  ;;  %p735_p1 = scmp.ne.s32.totalorder %s733_s24, %s734_s8  ;;  %p740_p12 = scmp.lt.s32.totalorder %s738_s30, %s734_s8 }
  0x2d   : > { %370 = vmatpush.msra.mxu0 %v361_v4  ;;  %v623_v33 = vld [vmem:[#allocation6] ss:$0 sm:$0xff]  ;;  %v624_v36 = vld [vmem:[%s1005_s2] ss:$0 sm:$0xff] }
  0x2e   : > { %v625_v39 = vld [vmem:[%s1007_s4] ss:$0 sm:$0xff]  ;;  %p736_p3 = pnand %p735_p1, %p916_p2  ;;  %p741_p13 = por %p740_p12, %p739_p11 }
  0x2f   : > { %371 = vmatpush.msra.mxu0 %v360_v5 }
  0x30   : > { %317 = vadd.xlane.f32.xlu0 %v316_v1  ;;  %p737_p7 = pneg %p736_p3 }
  0x31   : > { %372 = vmatpush.msra.mxu0 %v359_v6 }
  0x32   : > { %p742_p0 = pnand %p741_p13, %p737_p7 }
  0x33   : > { %373 = vmatpush.msra.mxu0 %v358_v7 }
  0x35   : > { %374 = vmatpush.msra.mxu0 %v357_v8 }
  0x37   : > { %375 = vmatpush.msra.mxu0 %v356_v9 }
  0x39   : > { %376 = vmatpush.msra.mxu0 %v355_v10 }
  0x3b   : > { %377 = vmatpush.msra.mxu0 %v354_v11 }
  0x3d   : > { %378 = vmatpush.msra.mxu0 %v353_v12 }
  0x3f   : > { %379 = vmatpush.msra.mxu0 %v352_v13 }
  0x41   : > { %380 = vmatpush.msra.mxu0 %v351_v14 }
  0x43   : > { %381 = vmatpush.msra.mxu0 %v350_v16 }
  0x45   : > { %382 = vmatpush.msra.mxu0 %v349_v17 }
  0x47   : > { %383 = vmatpush.msra.mxu0 %v348_v19 }
  0x9b   : > { %v314_v15 = vpop.xlane.xlu0 %313 }
  0x9c   : > { %v315_v18 = vmul.f32 0.03125, %v314_v15 }
  0x9e   : > { %v320_v21 = vmul.f32 %v315_v18, %v315_v18  ;;  %v323_v32 = vsub.f32 %v950_v0, %v315_v18 }
  0xa3   : > { %v318_v20 = vpop.xlane.xlu0 %317 }
  0xa4   : > { %v319_v22 = vmul.f32 0.03125, %v318_v20 }
  0xa6   : > { %v321_v23 = vsub.f32 %v319_v22, %v320_v21 }
  0xa8   : > { %v322_v24 = vmax.f32 %v321_v23, 0.0 }
  0xaa   : > { %v324_v25 = vadd.f32 1e-12, %v322_v24 }
  0xac   : > { %626 = vrsqrt.f32 %v324_v25  ;;  %vm331_vm1 = vweird.f32 %v324_v25 }
  0xb2   : > { %v627_v26 = vpop.eup %626 }
  0xb3   : > { %v326_v27 = vmul.f32 %v627_v26, %v324_v25  ;;  %vm332_vm0 = vweird.f32 %v627_v26 }
  0xb4   : > { %vm333_vm2 = vmor %vm331_vm1, %vm332_vm0 }
  0xb5   : > { %v327_v28 = vmul.f32 %v627_v26, %v326_v27 }
  0xb7   : > { %v328_v29 = vmul.f32 0.5, %v327_v28 }
  0xb9   : > { %v329_v30 = vsub.f32 1.5, %v328_v29 }
  0xbb   : > { %v330_v31 = vmul.f32 %v627_v26, %v329_v30 }
  0xbd   : > { %v334_v34 = vsel %vm333_vm2, %v627_v26, %v330_v31 }
  0xbe   : > { %v335_v35 = vmul.f32 %v334_v34, %v323_v32 }
  0xc0   : > { %v340_v37 = vmul.f32 %v623_v33, %v335_v35 }
  0xc2   : > { %v345_v38 = vadd.f32 %v624_v36, %v340_v37 }
  0xc4   : > { %384 = vmatmul.f32.vlgmr.msra.gmra.mxu0 %v345_v38 }
 0x141   : > { %v385_v40 = vpop.f32.mrf.mxu0 }
 0x142   : > { %v386_v41 = vadd.f32 %v625_v39, %v385_v40 }
 0x144   : > { %v389_v42 = vadd.f32 %v386_v41, %v950_v0 }
 0x146   : > { %390 = vst [vmem:[%s304_s14] sm:$0xff] %v389_v42 }
 0x147   : > { %745 = shalt.err (!%p742_p0)
}
 0x148   : > { %548 = dma.vmem_to_hbm [thread:$0]  (%p916_p2), %s406_s15, 128, %s408_s16, %s392_s21  }
 0x149 PF: > { %s419_s25 = sand.u32 1, %s784_s18   ;;  %p562_p4 = pnand %p526_p8, %p887_p5 }
 0x14a   : > { %s420_s10 = scalar_lea.sflag [#allocation5], %s419_s25 }
 0x14b   : > { %p563_p6 = pneg %p562_p4 }
 0x14d   : > { %779 = dma.done.wait (%p563_p6), %s420_s10, 128  }
 0x14e   : > { %781 = vsyncadd (%p563_p6), %s420_s10, 4294967168  ;;  %s22_s23 = sadd.s32 1, %s804_s23   ;;  %s1014_s18 = smov %s788_s19 }
 0x14f   : > { %p19_p9 = scmp.ge.s32.totalorder %s22_s23, 4   ;;  %s1015_s19 = smov %s792_s20 }
 0x150   : > { %s1016_s20 = smov %s926_s9  ;;  %s1017_s21 = smov %s800_s22 }
 0x151   : > { %s1018_s22 = smov %s1020_s17  ;;  %21 = sbr.rel (!%p19_p9) target bundleno = 7 (0x7), region = 101 }
 0x156   :  { %426 = vsyncpa [#allocation4], 1 }
 0x157   :  { %428 = vsyncpa [#allocation4 + $0x1], 1 }
 0x158   :  { %429 = vsyncpa [#allocation7], 1 }
 0x159   :  { %430 = vsyncpa [#allocation5], 1 }
 0x15a   :  { %432 = vsyncpa [#allocation5 + $0x1], 1 }

</bundles_post_ra>
